<compile_context>
chip_gen: v5e
topology: v5e:2x2
jax: 0.10.0
libtpu: 0.0.40
codegen_flags: <defaults>
</compile_context>

<pallas_src>
import numpy as np

import jax
import jax.numpy as jnp
from jax.experimental import pallas as pl
from jax.experimental.pallas import tpu as pltpu


# --------------------------------------------------------------------------
# Kernels
# --------------------------------------------------------------------------
def uupblock_main_kernel(x1_ref, x2_ref, utp_ref, w1_ref, b1_ref,
                         w2u_ref, w2s_ref, b2_ref, y_ref, stats_ref):
    """One (batch, output-time-tile) grid step; channels-first, time on lanes.

      x1_ref  : (K*C1, Lh)        K-tap-stacked, halo'd, pre-padded conv1 input
      x2_ref  : (K*C2, Tt)        K-tap-stacked, pre-padded skip input
      utp_ref : (Lh,  Tt+2*pad)   per-tile banded upsample matrix (conv2-padded)
      w1_ref  : (C1h, K*C1)       conv1 weights, taps folded into contraction
      b1_ref  : (C1h, 1)
      w2u_ref : (K, Cout, C1h)    conv2 weights acting on the upsampled path
      w2s_ref : (Cout, K*C2)      conv2 weights on the skip path, taps folded
      b2_ref  : (Cout, 1)
      y_ref   : (Cout, Tt)        relu(conv2) (pre-BN)
      stats_ref: (Cout, 2)        per-tile per-channel (sum, sum-of-squares)
    """
    f32 = jnp.float32
    K = w2u_ref.shape[0]
    Cout, Tt = y_ref.shape

    # ---- conv1 + ReLU: ONE MXU matmul (taps folded, K*C1-wide contraction) --
    h = jnp.dot(w1_ref[...], x1_ref[...], preferred_element_type=f32)
    h = jnp.maximum(h + b1_ref[...], 0.0).astype(x1_ref.dtype)       # (C1h, Lh)

    # ---- linear upsample (scale 2, align_corners=True), banded: one small ---
    # matmul with the per-tile local matrix; result is already conv2-padded.
    upw = jnp.dot(h, utp_ref[...], preferred_element_type=f32)
    upw = upw.astype(x1_ref.dtype)                                   # (C1h, Tt+2p)

    # ---- conv2 + ReLU over the implicit concat [upsample ; skip] ------------
    #   skip path: taps folded -> one matmul
    #   up   path: K tap matmuls over shifted windows of the upsampled tile
    acc = jnp.dot(w2s_ref[...], x2_ref[...], preferred_element_type=f32)
    for k in range(K):
        acc = acc + jnp.dot(w2u_ref[k], upw[:, k:k + Tt],
                            preferred_element_type=f32)
    y = jnp.maximum(acc + b2_ref[...], 0.0)                          # (Cout, Tt) f32

    y_ref[...] = y.astype(y_ref.dtype)
    stats_ref[:, 0:1] = jnp.sum(y, axis=1, keepdims=True)
    stats_ref[:, 1:2] = jnp.sum(y * y, axis=1, keepdims=True)


def bn_apply_kernel(y_ref, scale_ref, shift_ref, out_ref):
    """out = y * scale + shift (per channel); lane-dense store along time."""
    out_ref[...] = (y_ref[...].astype(jnp.float32) * scale_ref[...]
                    + shift_ref[...]).astype(out_ref.dtype)


# --------------------------------------------------------------------------
# Helpers
# --------------------------------------------------------------------------
def _choose_time_tile(t_out, requested):
    """Pick an output-time tile: divides Tout and is a multiple of 128, or Tout."""
    target = 512 if requested is None else requested
    target = min(target, t_out)
    if target == t_out:
        return t_out
    best = None
    t = 128
    while t <= target:
        if t_out % t == 0:
            best = t
        t += 128
    return best if best is not None else t_out


# --------------------------------------------------------------------------
# Wrapper
# --------------------------------------------------------------------------
def uupblock_forward(x1_nct, x2_nct, params, *, K=3, eps=1e-5,
                     compute_dtype=jnp.float32, time_tile=None,
                     vmem_limit_bytes=48 * 1024 * 1024):
    """x1: (N, C1, T1), x2: (N, C2, 2*T1), C1 == 2*C2 -> (N, Cout, 2*T1)."""
    pad = (K - 1) // 2
    N, C1, T1 = x1_nct.shape
    N2, C2, Tout = x2_nct.shape
    assert N == N2 and C1 == 2 * C2 and Tout == 2 * T1
    C1h = C1 // 2

    w1 = params["w1"]            # (K, C1h, C1)
    w2u = params["w2_up"]        # (K, Cout, C1h)
    w2s = params["w2_skip"]      # (K, Cout, C2)
    Cout = w2u.shape[1]

    # ---- output-time tiling --------------------------------------------
    Tt = _choose_time_tile(Tout, time_tile)
    assert Tout % Tt == 0 and (Tt == Tout or Tt % 128 == 0)
    nT = Tout // Tt

    # ---- linear-upsample matrix (numpy, trace-time constants) -----------
    jj = np.arange(Tout, dtype=np.float64)
    pp = jj * (T1 - 1) / max(Tout - 1, 1)
    i0 = np.minimum(np.floor(pp).astype(np.int64), T1 - 1)
    frac = pp - i0
    i1 = np.minimum(i0 + 1, T1 - 1)
    U = np.zeros((Tout, T1), dtype=np.float64)
    U[np.arange(Tout), i0] += 1.0 - frac
    U[np.arange(Tout), i1] += frac
    # transposed and zero-padded along output time so h @ utp is already
    # conv2-padded at the global sequence boundaries.
    utp_pad_np = np.pad(U.T, ((0, 0), (pad, pad)))        # (T1, Tout + 2*pad)

    # ---- banded windows: which h rows each output tile needs ------------
    r_lo, r_hi = [], []
    for g in range(nT):
        jl = max(g * Tt - pad, 0)
        jh = min(g * Tt + Tt + pad, Tout)                 # exclusive
        r_lo.append(int(i0[jl]))
        r_hi.append(int(i1[jh - 1]) + 1)
    Lh = max(hi - lo for lo, hi in zip(r_lo, r_hi))
    Lh = min(T1, ((Lh + 7) // 8) * 8)                     # sublane-friendly
    r0 = [min(r_lo[g], T1 - Lh) for g in range(nT)]       # widening is safe

    # ---- HBM-side tile construction (halo'd + K-tap-stacked) -------------
    # "same"-conv zero padding done once in HBM; stacking the K shifted taps
    # along channels folds the conv taps into the MXU contraction (trade:
    # K x input bytes, channels are tiny so this is cheap).
    x1p = jnp.pad(x1_nct, ((0, 0), (0, 0), (pad, pad))).astype(compute_dtype)
    x2p = jnp.pad(x2_nct, ((0, 0), (0, 0), (pad, pad))).astype(compute_dtype)

    x1_tiles = jnp.stack(
        [jnp.concatenate([x1p[:, :, r0[g] + k: r0[g] + k + Lh]
                          for k in range(K)], axis=1) for g in range(nT)],
        axis=1)                                           # (N, nT, K*C1, Lh)
    x2_tiles = jnp.stack(
        [jnp.concatenate([x2p[:, :, g * Tt + k: g * Tt + k + Tt]
                          for k in range(K)], axis=1) for g in range(nT)],
        axis=1)                                           # (N, nT, K*C2, Tt)
    utp_tiles = jnp.asarray(
        np.stack([utp_pad_np[r0[g]: r0[g] + Lh, g * Tt: g * Tt + Tt + 2 * pad]
                  for g in range(nT)], axis=0),
        dtype=compute_dtype)                              # (nT, Lh, Tt+2p)

    # ---- weight slabs (taps folded into the contraction axis) ------------
    w1_slab = jnp.transpose(w1, (1, 0, 2)).reshape(C1h, K * C1).astype(compute_dtype)
    w2s_slab = jnp.transpose(w2s, (1, 0, 2)).reshape(Cout, K * C2).astype(compute_dtype)
    w2u_c = w2u.astype(compute_dtype)
    b1c = params["b1"].reshape(C1h, 1).astype(jnp.float32)
    b2c = params["b2"].reshape(Cout, 1).astype(jnp.float32)

    # pre-BN intermediate; in bf16 mode this halves the extra HBM round trip.
    y_dtype = compute_dtype

    def inv(shape):
        shape = tuple(shape)
        nd = len(shape)
        return pl.BlockSpec(shape, lambda n, g: (0,) * nd)

    # ---- main fused kernel: conv1+relu -> banded upsample -> conv2+relu ---
    y, stats = pl.pallas_call(
        uupblock_main_kernel,
        grid=(N, nT),
        in_specs=[
            pl.BlockSpec((None, None, K * C1, Lh), lambda n, g: (n, g, 0, 0)),
            pl.BlockSpec((None, None, K * C2, Tt), lambda n, g: (n, g, 0, 0)),
            pl.BlockSpec((None, Lh, Tt + 2 * pad), lambda n, g: (g, 0, 0)),
            inv((C1h, K * C1)),
            inv((C1h, 1)),
            inv((K, Cout, C1h)),
            inv((Cout, K * C2)),
            inv((Cout, 1)),
        ],
        out_specs=(
            pl.BlockSpec((None, Cout, Tt), lambda n, g: (n, 0, g)),
            pl.BlockSpec((None, None, Cout, 2), lambda n, g: (n, g, 0, 0)),
        ),
        out_shape=(
            jax.ShapeDtypeStruct((N, Cout, Tout), y_dtype),
            jax.ShapeDtypeStruct((N, nT, Cout, 2), jnp.float32),
        ),
        compiler_params=pltpu.CompilerParams(
            dimension_semantics=("parallel", "parallel"),
            vmem_limit_bytes=vmem_limit_bytes),
    )(x1_tiles, x2_tiles, utp_tiles, w1_slab, b1c, w2u_c, w2s_slab, b2c)

    # ---- combine per-(batch, tile) partials -> BN scale/shift (tiny, XLA) --
    # training-mode batch statistics, biased variance (nn.BatchNorm1d.forward).
    tot = jnp.sum(stats, axis=(0, 1))                     # (Cout, 2)
    cnt = float(N * Tout)
    mean = tot[:, 0] / cnt
    var = jnp.maximum(tot[:, 1] / cnt - mean * mean, 0.0)
    rstd = jax.lax.rsqrt(var + eps)
    gamma = params["gamma"].astype(jnp.float32)
    beta = params["beta"].astype(jnp.float32)
    scale = (gamma * rstd).reshape(Cout, 1)
    shift = (beta - mean * gamma * rstd).reshape(Cout, 1)

    # ---- second pass: BN affine, big lane-dense blocks, aliased in place ---
    alias = {0: 0} if jnp.dtype(y_dtype) == jnp.dtype(jnp.float32) else {}
    out = pl.pallas_call(
        bn_apply_kernel,
        grid=(N,),
        in_specs=[
            pl.BlockSpec((None, Cout, Tout), lambda n: (n, 0, 0)),
            pl.BlockSpec((Cout, 1), lambda n: (0, 0)),
            pl.BlockSpec((Cout, 1), lambda n: (0, 0)),
        ],
        out_specs=pl.BlockSpec((None, Cout, Tout), lambda n: (n, 0, 0)),
        out_shape=jax.ShapeDtypeStruct((N, Cout, Tout), jnp.float32),
        input_output_aliases=alias,
        compiler_params=pltpu.CompilerParams(
            dimension_semantics=("parallel",),
            vmem_limit_bytes=vmem_limit_bytes),
    )(y, scale, shift)
    return out


# --------------------------------------------------------------------------
# Parameters & pure-JAX reference
# --------------------------------------------------------------------------
def make_params(key, in_channels, out_channels, K=3):
    """Deterministic synthetic parameters (PyTorch Conv1d layout + repacked)."""
    C1 = in_channels
    C1h = in_channels // 2
    Cout = out_channels
    k1, k2, k3, k4, k5, k6 = jax.random.split(key, 6)
    bound = 1.0 / jnp.sqrt(C1 * K)
    w1_pt = jax.random.uniform(k1, (C1h, C1, K), jnp.float32, -bound, bound)
    b1 = jax.random.uniform(k2, (C1h,), jnp.float32, -bound, bound)
    w2_pt = jax.random.uniform(k3, (Cout, C1, K), jnp.float32, -bound, bound)
    b2 = jax.random.uniform(k4, (Cout,), jnp.float32, -bound, bound)
    gamma = jax.random.uniform(k5, (Cout,), jnp.float32, 0.5, 1.5)
    beta = jax.random.uniform(k6, (Cout,), jnp.float32, -0.5, 0.5)
    return {
        # kernel layouts
        "w1": jnp.transpose(w1_pt, (2, 0, 1)),                   # (K, C1h, C1)
        "b1": b1,
        "w2_up": jnp.transpose(w2_pt[:, :C1h, :], (2, 0, 1)),    # (K, Cout, C1h)
        "w2_skip": jnp.transpose(w2_pt[:, C1h:, :], (2, 0, 1)),  # (K, Cout, C2)
        "b2": b2,
        "gamma": gamma,
        "beta": beta,
        # PyTorch-layout weights kept for the pure-JAX reference
        "w1_pt": w1_pt, "w2_pt": w2_pt,
    }


def reference_forward(x1, x2, params, *, K=3, eps=1e-5):
    """Pure-JAX reference mirroring the PyTorch module (training-mode BN)."""
    pad = (K - 1) // 2

    def conv1d(x, w_pt, b):
        y = jax.lax.conv_general_dilated(
            x, w_pt, window_strides=(1,), padding=[(pad, pad)],
            dimension_numbers=("NCH", "OIH", "NCH"))
        return y + b[None, :, None]

    N, C1, T1 = x1.shape
    T2 = x2.shape[2]
    h = jax.nn.relu(conv1d(x1, params["w1_pt"], params["b1"]))      # (N, C1h, T1)
    j = jnp.arange(T2, dtype=jnp.float32)
    p = j * (T1 - 1) / (T2 - 1)
    i0 = jnp.floor(p).astype(jnp.int32)
    frac = p - i0.astype(jnp.float32)
    i1 = jnp.minimum(i0 + 1, T1 - 1)
    up = (1.0 - frac)[None, None, :] * h[:, :, i0] + frac[None, None, :] * h[:, :, i1]
    cat = jnp.concatenate([up, x2], axis=1)
    y = jax.nn.relu(conv1d(cat, params["w2_pt"], params["b2"]))     # (N, Cout, T2)
    mean = jnp.mean(y, axis=(0, 2), keepdims=True)
    var = jnp.mean((y - mean) ** 2, axis=(0, 2), keepdims=True)
    y_hat = (y - mean) * jax.lax.rsqrt(var + eps)
    return params["gamma"][None, :, None] * y_hat + params["beta"][None, :, None]


if __name__ == "__main__":
    def run_case(case_key, N, in_ch, out_ch, T1, time_tile):
        kx1, kx2, kp = jax.random.split(case_key, 3)
        C2, T2 = in_ch // 2, 2 * T1
        x1 = jax.random.normal(kx1, (N, in_ch, T1), jnp.float32)
        x2 = jax.random.normal(kx2, (N, C2, T2), jnp.float32)
        params = make_params(kp, in_ch, out_ch)

        fwd = jax.jit(lambda a, b, p: uupblock_forward(a, b, p,
                                                       time_tile=time_tile))
        out = jax.block_until_ready(fwd(x1, x2, params))
        ref = jax.block_until_ready(reference_forward(x1, x2, params))

        assert out.shape == (N, out_ch, T2)
        assert jnp.allclose(out, ref, atol=1e-3, rtol=1e-3), (
            f"mismatch vs reference (max abs err "
            f"{float(jnp.max(jnp.abs(out - ref))):.3e})")

    key = jax.random.PRNGKey(0)
    k_small, k_big = jax.random.split(key)

    # Small case (single time tile): x1 (2, 8, 8), x2 (2, 4, 16).
    run_case(k_small, N=2, in_ch=8, out_ch=8, T1=8, time_tile=None)
    # Larger case exercising the multi-tile, halo'd time-tiling path.
    run_case(k_big, N=2, in_ch=16, out_ch=16, T1=128, time_tile=128)

    print("KERNEL_OK")
</pallas_src>

<mosaic_0001>
module attributes {stable_mosaic.version = 11 : i64} {
  func.func @bn_apply_kernel(%arg0: i32, %arg1: memref<1x8x16xf32, #tpu.memory_space<vmem>>, %arg2: memref<8x1xf32, #tpu.memory_space<vmem>>, %arg3: memref<8x1xf32, #tpu.memory_space<vmem>>, %arg4: memref<1x8x16xf32, #tpu.memory_space<vmem>>) attributes {dimension_semantics = [#tpu.dimension_semantics<parallel>], iteration_bounds = array<i64: 2>, scalar_prefetch = 0 : i64, scratch_operands = 0 : i64, tpu.core_type = #tpu.core_type<tc>, window_params = [{transform_indices = @transform_0, window_bounds = array<i64: 1, 8, 16>}, {pipeline_mode = #tpu.pipeline_mode<synchronous>, transform_indices = @transform_1, window_bounds = array<i64: 8, 1>}, {pipeline_mode = #tpu.pipeline_mode<synchronous>, transform_indices = @transform_2, window_bounds = array<i64: 8, 1>}, {transform_indices = @transform_3, window_bounds = array<i64: 1, 8, 16>}]} {
    %c0 = arith.constant 0 : index
    %c0_0 = arith.constant 0 : index
    %c0_1 = arith.constant 0 : index
    %0 = vector.load %arg1[%c0, %c0_0, %c0_1] : memref<1x8x16xf32, #tpu.memory_space<vmem>>, vector<1x8x16xf32>
    %1 = vector.shape_cast %0 : vector<1x8x16xf32> to vector<8x16xf32>
    %c0_2 = arith.constant 0 : index
    %c0_3 = arith.constant 0 : index
    %2 = vector.load %arg2[%c0_2, %c0_3] : memref<8x1xf32, #tpu.memory_space<vmem>>, vector<8x1xf32>
    %3 = vector.broadcast %2 : vector<8x1xf32> to vector<8x16xf32>
    %4 = arith.mulf %1, %3 : vector<8x16xf32>
    %c0_4 = arith.constant 0 : index
    %c0_5 = arith.constant 0 : index
    %5 = vector.load %arg3[%c0_4, %c0_5] : memref<8x1xf32, #tpu.memory_space<vmem>>, vector<8x1xf32>
    %6 = vector.broadcast %5 : vector<8x1xf32> to vector<8x16xf32>
    %7 = arith.addf %4, %6 : vector<8x16xf32>
    %c0_6 = arith.constant 0 : index
    %c0_7 = arith.constant 0 : index
    %c0_8 = arith.constant 0 : index
    %8 = vector.load %arg4[%c0_6, %c0_7, %c0_8] : memref<1x8x16xf32, #tpu.memory_space<vmem>>, vector<1x8x16xf32>
    %9 = vector.shape_cast %8 : vector<1x8x16xf32> to vector<8x16xf32>
    %10 = vector.shape_cast %7 : vector<8x16xf32> to vector<1x8x16xf32>
    tpu.vector_store %arg4[%c0_6, %c0_7, %c0_8], %10 {strides = array<i32>} : memref<1x8x16xf32, #tpu.memory_space<vmem>>, vector<1x8x16xf32>,
    return
  }
  func.func @transform_0(%arg0: i32) -> (i32, i32, i32) {
    %c0_i32 = arith.constant 0 : i32
    %c0_i32_0 = arith.constant 0 : i32
    %c0_i32_1 = arith.constant 0 : i32
    return %arg0, %c0_i32, %c0_i32_0 : i32, i32, i32
  }
  func.func @transform_1(%arg0: i32) -> (i32, i32) {
    %c0_i32 = arith.constant 0 : i32
    %c0_i32_0 = arith.constant 0 : i32
    %c0_i32_1 = arith.constant 0 : i32
    return %c0_i32, %c0_i32_0 : i32, i32
  }
  func.func @transform_2(%arg0: i32) -> (i32, i32) {
    %c0_i32 = arith.constant 0 : i32
    %c0_i32_0 = arith.constant 0 : i32
    %c0_i32_1 = arith.constant 0 : i32
    return %c0_i32, %c0_i32_0 : i32, i32
  }
  func.func @transform_3(%arg0: i32) -> (i32, i32, i32) {
    %c0_i32 = arith.constant 0 : i32
    %c0_i32_0 = arith.constant 0 : i32
    %c0_i32_1 = arith.constant 0 : i32
    return %arg0, %c0_i32, %c0_i32_0 : i32, i32, i32
  }
}

module attributes {stable_mosaic.version = 11 : i64} {
  func.func @uupblock_main_kernel(%arg0: i32, %arg1: i32, %arg2: memref<1x1x24x8xf32, #tpu.memory_space<vmem>>, %arg3: memref<1x1x12x16xf32, #tpu.memory_space<vmem>>, %arg4: memref<1x8x18xf32, #tpu.memory_space<vmem>>, %arg5: memref<4x24xf32, #tpu.memory_space<vmem>>, %arg6: memref<4x1xf32, #tpu.memory_space<vmem>>, %arg7: memref<3x8x4xf32, #tpu.memory_space<vmem>>, %arg8: memref<8x12xf32, #tpu.memory_space<vmem>>, %arg9: memref<8x1xf32, #tpu.memory_space<vmem>>, %arg10: memref<1x8x16xf32, #tpu.memory_space<vmem>>, %arg11: memref<1x1x8x2xf32, #tpu.memory_space<vmem>>) attributes {dimension_semantics = [#tpu.dimension_semantics<parallel>, #tpu.dimension_semantics<parallel>], iteration_bounds = array<i64: 2, 1>, scalar_prefetch = 0 : i64, scratch_operands = 0 : i64, tpu.core_type = #tpu.core_type<tc>, window_params = [{transform_indices = @transform_0, window_bounds = array<i64: 1, 1, 24, 8>}, {transform_indices = @transform_1, window_bounds = array<i64: 1, 1, 12, 16>}, {transform_indices = @transform_2, window_bounds = array<i64: 1, 8, 18>}, {pipeline_mode = #tpu.pipeline_mode<synchronous>, transform_indices = @transform_3, window_bounds = array<i64: 4, 24>}, {pipeline_mode = #tpu.pipeline_mode<synchronous>, transform_indices = @transform_4, window_bounds = array<i64: 4, 1>}, {pipeline_mode = #tpu.pipeline_mode<synchronous>, transform_indices = @transform_5, window_bounds = array<i64: 3, 8, 4>}, {pipeline_mode = #tpu.pipeline_mode<synchronous>, transform_indices = @transform_6, window_bounds = array<i64: 8, 12>}, {pipeline_mode = #tpu.pipeline_mode<synchronous>, transform_indices = @transform_7, window_bounds = array<i64: 8, 1>}, {transform_indices = @transform_8, window_bounds = array<i64: 1, 8, 16>}, {transform_indices = @transform_9, window_bounds = array<i64: 1, 1, 8, 2>}]} {
    %c0 = arith.constant 0 : index
    %c0_0 = arith.constant 0 : index
    %0 = vector.load %arg5[%c0, %c0_0] : memref<4x24xf32, #tpu.memory_space<vmem>>, vector<4x24xf32>
    %c0_1 = arith.constant 0 : index
    %c0_2 = arith.constant 0 : index
    %c0_3 = arith.constant 0 : index
    %c0_4 = arith.constant 0 : index
    %1 = vector.load %arg2[%c0_1, %c0_2, %c0_3, %c0_4] : memref<1x1x24x8xf32, #tpu.memory_space<vmem>>, vector<1x1x24x8xf32>
    %2 = vector.shape_cast %1 : vector<1x1x24x8xf32> to vector<24x8xf32>
    %cst = arith.constant dense<0.000000e+00> : vector<4x8xf32>
    %3 = tpu.matmul %0, %2, %cst {dimension_numbers = #tpu.dot_dimension_numbers<[1], [0], [0], [1], [0, 0, 1, 1], [], []>} : vector<4x24xf32>, vector<24x8xf32>, vector<4x8xf32> -> vector<4x8xf32>
    %c0_5 = arith.constant 0 : index
    %c0_6 = arith.constant 0 : index
    %4 = vector.load %arg6[%c0_5, %c0_6] : memref<4x1xf32, #tpu.memory_space<vmem>>, vector<4x1xf32>
    %5 = vector.broadcast %4 : vector<4x1xf32> to vector<4x8xf32>
    %6 = arith.addf %3, %5 : vector<4x8xf32>
    %cst_7 = arith.constant 0.000000e+00 : f32
    %7 = vector.broadcast %cst_7 : f32 to vector<4x8xf32>
    %8 = arith.maximumf %6, %7 : vector<4x8xf32>
    %c0_8 = arith.constant 0 : index
    %c0_9 = arith.constant 0 : index
    %c0_10 = arith.constant 0 : index
    %9 = vector.load %arg4[%c0_8, %c0_9, %c0_10] : memref<1x8x18xf32, #tpu.memory_space<vmem>>, vector<1x8x18xf32>
    %10 = vector.shape_cast %9 : vector<1x8x18xf32> to vector<8x18xf32>
    %cst_11 = arith.constant dense<0.000000e+00> : vector<4x18xf32>
    %11 = tpu.matmul %8, %10, %cst_11 {dimension_numbers = #tpu.dot_dimension_numbers<[1], [0], [0], [1], [0, 0, 1, 1], [], []>} : vector<4x8xf32>, vector<8x18xf32>, vector<4x18xf32> -> vector<4x18xf32>
    %c0_12 = arith.constant 0 : index
    %c0_13 = arith.constant 0 : index
    %12 = vector.load %arg8[%c0_12, %c0_13] : memref<8x12xf32, #tpu.memory_space<vmem>>, vector<8x12xf32>
    %c0_14 = arith.constant 0 : index
    %c0_15 = arith.constant 0 : index
    %c0_16 = arith.constant 0 : index
    %c0_17 = arith.constant 0 : index
    %13 = vector.load %arg3[%c0_14, %c0_15, %c0_16, %c0_17] : memref<1x1x12x16xf32, #tpu.memory_space<vmem>>, vector<1x1x12x16xf32>
    %14 = vector.shape_cast %13 : vector<1x1x12x16xf32> to vector<12x16xf32>
    %cst_18 = arith.constant dense<0.000000e+00> : vector<8x16xf32>
    %15 = tpu.matmul %12, %14, %cst_18 {dimension_numbers = #tpu.dot_dimension_numbers<[1], [0], [0], [1], [0, 0, 1, 1], [], []>} : vector<8x12xf32>, vector<12x16xf32>, vector<8x16xf32> -> vector<8x16xf32>
    %c0_19 = arith.constant 0 : index
    %c0_20 = arith.constant 0 : index
    %c0_21 = arith.constant 0 : index
    %16 = vector.load %arg7[%c0_19, %c0_20, %c0_21] : memref<3x8x4xf32, #tpu.memory_space<vmem>>, vector<1x8x4xf32>
    %17 = vector.shape_cast %16 : vector<1x8x4xf32> to vector<8x4xf32>
    %18 = vector.extract_strided_slice %11 {offsets = [0, 0], sizes = [4, 16], strides = [1, 1]} : vector<4x18xf32> to vector<4x16xf32>
    %cst_22 = arith.constant dense<0.000000e+00> : vector<8x16xf32>
    %19 = tpu.matmul %17, %18, %cst_22 {dimension_numbers = #tpu.dot_dimension_numbers<[1], [0], [0], [1], [0, 0, 1, 1], [], []>} : vector<8x4xf32>, vector<4x16xf32>, vector<8x16xf32> -> vector<8x16xf32>
    %20 = arith.addf %15, %19 : vector<8x16xf32>
    %c1 = arith.constant 1 : index
    %c0_23 = arith.constant 0 : index
    %c0_24 = arith.constant 0 : index
    %21 = vector.load %arg7[%c1, %c0_23, %c0_24] : memref<3x8x4xf32, #tpu.memory_space<vmem>>, vector<1x8x4xf32>
    %22 = vector.shape_cast %21 : vector<1x8x4xf32> to vector<8x4xf32>
    %23 = vector.extract_strided_slice %11 {offsets = [0, 1], sizes = [4, 16], strides = [1, 1]} : vector<4x18xf32> to vector<4x16xf32>
    %cst_25 = arith.constant dense<0.000000e+00> : vector<8x16xf32>
    %24 = tpu.matmul %22, %23, %cst_25 {dimension_numbers = #tpu.dot_dimension_numbers<[1], [0], [0], [1], [0, 0, 1, 1], [], []>} : vector<8x4xf32>, vector<4x16xf32>, vector<8x16xf32> -> vector<8x16xf32>
    %25 = arith.addf %20, %24 : vector<8x16xf32>
    %c2 = arith.constant 2 : index
    %c0_26 = arith.constant 0 : index
    %c0_27 = arith.constant 0 : index
    %26 = vector.load %arg7[%c2, %c0_26, %c0_27] : memref<3x8x4xf32, #tpu.memory_space<vmem>>, vector<1x8x4xf32>
    %27 = vector.shape_cast %26 : vector<1x8x4xf32> to vector<8x4xf32>
    %28 = vector.extract_strided_slice %11 {offsets = [0, 2], sizes = [4, 16], strides = [1, 1]} : vector<4x18xf32> to vector<4x16xf32>
    %cst_28 = arith.constant dense<0.000000e+00> : vector<8x16xf32>
    %29 = tpu.matmul %27, %28, %cst_28 {dimension_numbers = #tpu.dot_dimension_numbers<[1], [0], [0], [1], [0, 0, 1, 1], [], []>} : vector<8x4xf32>, vector<4x16xf32>, vector<8x16xf32> -> vector<8x16xf32>
    %30 = arith.addf %25, %29 : vector<8x16xf32>
    %c0_29 = arith.constant 0 : index
    %c0_30 = arith.constant 0 : index
    %31 = vector.load %arg9[%c0_29, %c0_30] : memref<8x1xf32, #tpu.memory_space<vmem>>, vector<8x1xf32>
    %32 = vector.broadcast %31 : vector<8x1xf32> to vector<8x16xf32>
    %33 = arith.addf %30, %32 : vector<8x16xf32>
    %cst_31 = arith.constant 0.000000e+00 : f32
    %34 = vector.broadcast %cst_31 : f32 to vector<8x16xf32>
    %35 = arith.maximumf %33, %34 : vector<8x16xf32>
    %c0_32 = arith.constant 0 : index
    %c0_33 = arith.constant 0 : index
    %c0_34 = arith.constant 0 : index
    %36 = vector.load %arg10[%c0_32, %c0_33, %c0_34] : memref<1x8x16xf32, #tpu.memory_space<vmem>>, vector<1x8x16xf32>
    %37 = vector.shape_cast %36 : vector<1x8x16xf32> to vector<8x16xf32>
    %38 = vector.shape_cast %35 : vector<8x16xf32> to vector<1x8x16xf32>
    tpu.vector_store %arg10[%c0_32, %c0_33, %c0_34], %38 {strides = array<i32>} : memref<1x8x16xf32, #tpu.memory_space<vmem>>, vector<1x8x16xf32>,
    %cst_35 = arith.constant dense<0.000000e+00> : vector<8xf32>
    %39 = vector.multi_reduction <add>, %35, %cst_35 [1] : vector<8x16xf32> to vector<8xf32>
    %40 = vector.shape_cast %39 : vector<8xf32> to vector<8x1xf32>
    %c0_36 = arith.constant 0 : index
    %c0_37 = arith.constant 0 : index
    %c0_38 = arith.constant 0 : index
    %c0_39 = arith.constant 0 : index
    %41 = vector.load %arg11[%c0_36, %c0_37, %c0_38, %c0_39] : memref<1x1x8x2xf32, #tpu.memory_space<vmem>>, vector<1x1x8x1xf32>
    %42 = vector.shape_cast %41 : vector<1x1x8x1xf32> to vector<8x1xf32>
    %43 = vector.shape_cast %40 : vector<8x1xf32> to vector<1x1x8x1xf32>
    tpu.vector_store %arg11[%c0_36, %c0_37, %c0_38, %c0_39], %43 {strides = array<i32>} : memref<1x1x8x2xf32, #tpu.memory_space<vmem>>, vector<1x1x8x1xf32>,
    %44 = arith.mulf %35, %35 : vector<8x16xf32>
    %cst_40 = arith.constant dense<0.000000e+00> : vector<8xf32>
    %45 = vector.multi_reduction <add>, %44, %cst_40 [1] : vector<8x16xf32> to vector<8xf32>
    %46 = vector.shape_cast %45 : vector<8xf32> to vector<8x1xf32>
    %c0_41 = arith.constant 0 : index
    %c0_42 = arith.constant 0 : index
    %c0_43 = arith.constant 0 : index
    %c1_44 = arith.constant 1 : index
    %47 = vector.load %arg11[%c0_41, %c0_42, %c0_43, %c1_44] : memref<1x1x8x2xf32, #tpu.memory_space<vmem>>, vector<1x1x8x1xf32>
    %48 = vector.shape_cast %47 : vector<1x1x8x1xf32> to vector<8x1xf32>
    %49 = vector.shape_cast %46 : vector<8x1xf32> to vector<1x1x8x1xf32>
    tpu.vector_store %arg11[%c0_41, %c0_42, %c0_43, %c1_44], %49 {strides = array<i32>} : memref<1x1x8x2xf32, #tpu.memory_space<vmem>>, vector<1x1x8x1xf32>,
    return
  }
  func.func @transform_0(%arg0: i32, %arg1: i32) -> (i32, i32, i32, i32) {
    %c0_i32 = arith.constant 0 : i32
    %c0_i32_0 = arith.constant 0 : i32
    %c0_i32_1 = arith.constant 0 : i32
    return %arg0, %arg1, %c0_i32, %c0_i32_0 : i32, i32, i32, i32
  }
  func.func @transform_1(%arg0: i32, %arg1: i32) -> (i32, i32, i32, i32) {
    %c0_i32 = arith.constant 0 : i32
    %c0_i32_0 = arith.constant 0 : i32
    %c0_i32_1 = arith.constant 0 : i32
    return %arg0, %arg1, %c0_i32, %c0_i32_0 : i32, i32, i32, i32
  }
  func.func @transform_2(%arg0: i32, %arg1: i32) -> (i32, i32, i32) {
    %c0_i32 = arith.constant 0 : i32
    %c0_i32_0 = arith.constant 0 : i32
    %c0_i32_1 = arith.constant 0 : i32
    return %arg1, %c0_i32, %c0_i32_0 : i32, i32, i32
  }
  func.func @transform_3(%arg0: i32, %arg1: i32) -> (i32, i32) {
    %c0_i32 = arith.constant 0 : i32
    %c0_i32_0 = arith.constant 0 : i32
    %c0_i32_1 = arith.constant 0 : i32
    return %c0_i32, %c0_i32_0 : i32, i32
  }
  func.func @transform_4(%arg0: i32, %arg1: i32) -> (i32, i32) {
    %c0_i32 = arith.constant 0 : i32
    %c0_i32_0 = arith.constant 0 : i32
    %c0_i32_1 = arith.constant 0 : i32
    return %c0_i32, %c0_i32_0 : i32, i32
  }
  func.func @transform_5(%arg0: i32, %arg1: i32) -> (i32, i32, i32) {
    %c0_i32 = arith.constant 0 : i32
    %c0_i32_0 = arith.constant 0 : i32
    %c0_i32_1 = arith.constant 0 : i32
    %c0_i32_2 = arith.constant 0 : i32
    return %c0_i32, %c0_i32_0, %c0_i32_1 : i32, i32, i32
  }
  func.func @transform_6(%arg0: i32, %arg1: i32) -> (i32, i32) {
    %c0_i32 = arith.constant 0 : i32
    %c0_i32_0 = arith.constant 0 : i32
    %c0_i32_1 = arith.constant 0 : i32
    return %c0_i32, %c0_i32_0 : i32, i32
  }
  func.func @transform_7(%arg0: i32, %arg1: i32) -> (i32, i32) {
    %c0_i32 = arith.constant 0 : i32
    %c0_i32_0 = arith.constant 0 : i32
    %c0_i32_1 = arith.constant 0 : i32
    return %c0_i32, %c0_i32_0 : i32, i32
  }
  func.func @transform_8(%arg0: i32, %arg1: i32) -> (i32, i32, i32) {
    %c0_i32 = arith.constant 0 : i32
    %c0_i32_0 = arith.constant 0 : i32
    return %arg0, %c0_i32, %arg1 : i32, i32, i32
  }
  func.func @transform_9(%arg0: i32, %arg1: i32) -> (i32, i32, i32, i32) {
    %c0_i32 = arith.constant 0 : i32
    %c0_i32_0 = arith.constant 0 : i32
    %c0_i32_1 = arith.constant 0 : i32
    return %arg0, %arg1, %c0_i32, %c0_i32_0 : i32, i32, i32, i32
  }
}

</mosaic_0001>

<bundles_post_ra>
// kernel: _lambda_.3
= control target key start
LH: loop header
LB: loop body
LE: loop exit
PB: predicated region body
PF: predicated region fallthrough
CT: control target
= control target key end

     0   :  { %8 = vsyncpa [#allocation3], 0  ;;  %s603_s0 = inlined_call_operand.hbm [shape: f32[2,8,16], index: 0, kind: input, shape index: {}, may-alias: {0,3}]   ;;  %s604_s1 = inlined_call_operand.vmem [shape: f32[8,1], index: 1, kind: input, shape index: {}]   ;;  %s605_s2 = inlined_call_operand.vmem [shape: f32[8,1], index: 2, kind: input, shape index: {}]   ;;  %s606_s3 = inlined_call_operand.hbm [shape: f32[2,8,16], index: 3, kind: output, shape index: {}, may-alias: {0,3}]  }
   0x1   :  { %10 = vsyncpa [#allocation3 + $0x1], 0 }
   0x2   :  { %11 = vsyncpa [#allocation4], 0 }
   0x3   :  { %13 = vsyncpa [#allocation4 + $0x1], 0  ;;  %s470_s12 = smov 0   ;;  %s472_s13 = smov 0  }
   0x4   :  { %s474_s14 = smov 0   ;;  %s476_s15 = smov 0  }
   0x5 LB: > { %s491_s16 = sadd.s32 4294967295, %s447_s15   ;;  %s291_s17 = sadd.s32 4294967294, %s447_s15   ;;  %s447_s15 = sphi %s476_s15, %s616_s15   ;;  %s443_s14 = sphi %s474_s14, %s615_s14   ;;  %s439_s13 = sphi %s472_s13, %s614_s13   ;;  %s435_s12 = sphi %s470_s12, %s613_s12  }
   0x6   : > { %s495_s18 = sadd.s32 1, %s447_s15   ;;  %s26_s19 = sadd.s32 1, %s443_s14 }
   0x7   : > { %s23_s20 = ssub.s32 %s447_s15, %s495_s18  ;;  %p33_p0 = scmp.ne.s32.totalorder %s443_s14, %s439_s13 }
   0x8   : > { %p24_p1 = scmp.eq.s32.totalorder %s23_s20, 0  ;;  %p34_p2 = scmp.eq.s32.totalorder %s447_s15, 0 }
   0x9   : > { %p39_p3 = scmp.ne.s32.totalorder %s439_s13, %s435_s12  ;;  %p40_p4 = scmp.eq.s32.totalorder %s491_s16, 0 }
   0xa   : > { %s507_s21 = scalar_select %p24_p1, %s443_s14, %s26_s19  }
   0xb   : > { %p509_p5 = por %p34_p2, %p33_p0  ;;  %p513_p6 = por %p40_p4, %p39_p3 }
   0xc   : > { %p105_p7 = scmp.eq.s32.totalorder %s491_s16, 1  ;;  %p111_p8 = scmp.eq.s32.totalorder %s291_s17, 1 }
   0xd   : > { %p315_p10 = scmp.lt.s32.totalorder %s447_s15, 2  ;;  %s137_s26 = sand.u32 1, %s443_s14  }
   0xe   : > { %p520_p11 = por %p105_p7, %p33_p0  ;;  %p524_p12 = por %p111_p8, %p39_p3 }
   0xf   : > { %s295_s27 = sshll.u32 %s447_s15, 3  ;;  %s294_s28 = sshll.u32 %s137_s26, 3 }
  0x10   : > { %s145_s4 = scalar_lea.hbm %s603_s0, %s295_s27  ;;  %s141_s6 = scalar_lea.vmem [#allocation2], %s294_s28 }
  0x11   : > { %s147_s5 = sshll.u32 %s145_s4, 4  ;;  %s149_s7 = sshll.u32 %s141_s6, 4  ;;  %s148_s5 = int_to_ptr.hbm [resolvable:$true] %s147_s5  ;;  %s150_s7 = int_to_ptr.vmem [resolvable:$true] %s149_s7 }
  0x12   : > { %p535_p13 = pnand %p315_p10, %p509_p5  ;;  %p296_p0 = scmp.ge.s32.totalorder %s447_s15, 1 }
  0x13   : > { %p154_p1 = scmp.lt.s32.totalorder %s447_s15, 3  ;;  %s138_s9 = scalar_lea.sflag [#allocation3], %s137_s26 }
  0x14   : > { %s351_s10 = sshra.s32 %s148_s5, 4  ;;  %p355_p3 = pneg %p535_p13  ;;  %s352_s10 = int_to_ptr.hbm [resolvable:$true] %s351_s10 }
  0x15   : > { %s353_s11 = scalar_lea.hbm %s352_s10, 8  ;;  %s358_s20 = scalar_lea.hbm %s603_s0, 16 }
  0x16   : > { %p354_p2 = scmp.ne.s32.totalorder %s352_s10, %s353_s11  ;;  %p359_p5 = scmp.lt.s32.totalorder %s352_s10, %s603_s0 }
  0x17   : > { %p360_p8 = scmp.lt.s32.totalorder %s358_s20, %s353_s11 }
  0x18   : > { %p356_p4 = pnand %p355_p3, %p354_p2 }
  0x19   : > { %p361_p10 = por %p360_p8, %p359_p5 }
  0x1a   : > { %p357_p7 = pneg %p356_p4 }
  0x1c   : > { %p362_p9 = pnand %p361_p10, %p357_p7 }
  0x1e   : > { %365 = shalt.err (!%p362_p9)
}
  0x1f   : > { %310 = dma.hbm_to_vmem [thread:$0]  (!%p535_p13), %s148_s5, 128, %s150_s7, %s138_s9  }
  0x20   : > { %p155_p2 = pnand %p296_p0, %p154_p1 }
  0x21   : > { %s556_s26 = sand.u32 (!%p155_p2), 1, %s439_s13  }
  0x22   : > { %158 = sbr.rel (%p155_p2) target bundleno = 170 (0xaa), region = 32  ;;  %s297_s28 = sshll.u32 (!%p155_p2), %s556_s26, 3 }
  0x23   : > { %s161_s29 = scalar_lea.sflag (!%p155_p2), [#allocation3], %s556_s26  ;;  %s164_s30 = scalar_lea.vmem (!%p155_p2), [#allocation2], %s297_s28 }
  0x27   : > { %426 = dma.done.wait (%p513_p6), %s161_s29, 128  }
  0x28   : > { %428 = vsyncadd (%p513_p6), %s161_s29, 4294967168  ;;  %v449_v0 = vmov 0   ;;  %v189_v1 = vld [vmem:[%s604_s1] sm:$0xff]  ;;  %s300_s8 = sshll.u32 %s491_s16, 3  ;;  %s187_s11 = scalar_lea.vmem [#allocation5], %s297_s28  ;;  %vm203_vm0 = vcmask 130048  }
  0x29   : > { %350 = vset.pattern.permute.xlu0 %v449_v0  ;;  %v196_v2 = vld [vmem:[%s605_s2] sm:$0xff]  ;;  %s216_s23 = scalar_lea.hbm %s606_s3, %s300_s8  ;;  %s218_s17 = sshll.u32 %s187_s11, 4  ;;  %s219_s17 = int_to_ptr.vmem [resolvable:$true] %s218_s17 }
  0x2a   : > { %192 = vperm.xlu0 %350, %v189_v1   ;;  %v188_v4 = vld [vmem:[%s164_s30] sm:$0xff]  ;;  %s220_s19 = sshll.u32 %s216_s23, 4  ;;  %s206_s20 = scalar_lea.sflag [#allocation4], %s556_s26  ;;  %s221_s19 = int_to_ptr.hbm [resolvable:$true] %s220_s19 }
  0x2b   : > { %s395_s22 = sshra.s32 %s221_s19, 4  ;;  %s401_s28 = scalar_lea.hbm %s606_s3, 16  ;;  %s396_s22 = int_to_ptr.hbm [resolvable:$true] %s395_s22 }
  0x2c   : > { %s397_s16 = scalar_lea.hbm %s396_s22, 8  ;;  %p402_p0 = scmp.lt.s32.totalorder %s396_s22, %s606_s3 }
  0x2d   : > { %p398_p6 = scmp.ne.s32.totalorder %s396_s22, %s397_s16  ;;  %p403_p1 = scmp.lt.s32.totalorder %s401_s28, %s397_s16 }
  0x2f   : > { %p399_p9 = pnand %p398_p6, %p520_p11  ;;  %p404_p3 = por %p403_p1, %p402_p0 }
  0x31   : > { %p400_p13 = pneg %p399_p9 }
  0x32   : > { %199 = vperm.xlu0 %350, %v196_v2  }
  0x33   : > { %p405_p4 = pnand %p404_p3, %p400_p13 }
  0x9c   : > { %v193_v3 = vpop.permute.xlu0 %192 }
  0x9d   : > { %v195_v5 = vmul.f32 %v193_v3, %v188_v4 }
  0xa4   : > { %v200_v6 = vpop.permute.xlu0 %199 }
  0xa5   : > { %v202_v7 = vadd.f32 %v200_v6, %v195_v5 }
  0xa7   : > { %204 = vst.msk [vmem:[%s187_s11] sm:$0xff] %vm203_vm0, %v202_v7 }
  0xa8   : > { %408 = shalt.err (!%p405_p4)
}
  0xa9   : > { %305 = dma.vmem_to_hbm [thread:$0]  (%p520_p11), %s219_s17, 128, %s221_s19, %s206_s20  }
  0xaa PF: > { %s232_s26 = sand.u32 1, %s435_s12   ;;  %p612_p7 = scmp.ge.s32.totalorder %s447_s15, 2 }
  0xab   : > { %s233_s5 = scalar_lea.sflag [#allocation4], %s232_s26 }
  0xac   : > { %p312_p5 = pnand %p612_p7, %p524_p12 }
  0xae   : > { %p313_p8 = pneg %p312_p5 }
  0xb0   : > { %430 = dma.done.wait (%p313_p8), %s233_s5, 128  }
  0xb1   : > { %432 = vsyncadd (%p313_p8), %s233_s5, 4294967168  ;;  %p16_p10 = scmp.ge.s32.totalorder %s495_s18, 4   ;;  %s613_s12 = smov %s439_s13 }
  0xb2   : > { %s614_s13 = smov %s443_s14  ;;  %s615_s14 = smov %s507_s21 }
  0xb3   : > { %s616_s15 = smov %s495_s18  ;;  %18 = sbr.rel (!%p16_p10) target bundleno = 5 (0x5), region = 77 }
  0xb8   :  { %239 = vsyncpa [#allocation3], 1 }
  0xb9   :  { %241 = vsyncpa [#allocation3 + $0x1], 1 }
  0xba   :  { %242 = vsyncpa [#allocation4], 1 }
  0xbb   :  { %244 = vsyncpa [#allocation4 + $0x1], 1 }

// kernel: _lambda_.2
= control target key start
LH: loop header
LB: loop body
LE: loop exit
PB: predicated region body
PF: predicated region fallthrough
CT: control target
= control target key end

     0   :  { %s1164_s0 = inlined_call_operand.vmem [shape: f32[2,1,24,8], index: 0, kind: input, shape index: {}]   ;;  %s1165_s1 = inlined_call_operand.vmem [shape: f32[2,1,12,16], index: 1, kind: input, shape index: {}]   ;;  %s1166_s2 = inlined_call_operand.vmem [shape: f32[1,8,18], index: 2, kind: input, shape index: {}]   ;;  %s1167_s3 = inlined_call_operand.vmem [shape: f32[4,24], index: 3, kind: input, shape index: {}]   ;;  %s1168_s4 = inlined_call_operand.vmem [shape: f32[4,1], index: 4, kind: input, shape index: {}]   ;;  %s1169_s5 = inlined_call_operand.vmem [shape: f32[3,8,4], index: 5, kind: input, shape index: {}]   ;;  %s1170_s6 = inlined_call_operand.vmem [shape: f32[8,12], index: 6, kind: input, shape index: {}]   ;;  %s1171_s7 = inlined_call_operand.vmem [shape: f32[8,1], index: 7, kind: input, shape index: {}]   ;;  %s1172_s8 = inlined_call_operand.hbm [shape: f32[2,8,16], index: 8, kind: output, shape index: {0}]   ;;  %s1173_s9 = inlined_call_operand.vmem [shape: f32[2,1,8,2], index: 9, kind: output, shape index: {1}]  }
   0x1   :  { %1174 = sst [smem:[#allocation5_spill]] %s1164_s0 }
   0x2   :  { %15 = vsyncpa [#allocation3], 0 }
   0x3   :  { %17 = vsyncpa [#allocation3 + $0x1], 0  ;;  %s1022_s30 = smov 0   ;;  %s1024_s10 = smov 0  }
   0x4   :  { %s1026_s11 = smov 0   ;;  %s1028_s12 = smov 0  }
   0x5   :  { %s1030_s13 = smov 0   ;;  %s1032_s14 = smov 0  }
   0x6 LB: > { %s800_s15 = sadd.s32 4294967295, %s967_s14   ;;  %s801_s16 = sadd.s32 4294967294, %s967_s14   ;;  %s967_s14 = sphi %s1032_s14, %s23_s14   ;;  %s963_s13 = sphi %s1030_s13, %s1182_s13   ;;  %s959_s12 = sphi %s1028_s12, %s1181_s12   ;;  %s955_s11 = sphi %s1026_s11, %s1180_s11   ;;  %s951_s10 = sphi %s1024_s10, %s1179_s10   ;;  %s947_s30 = sphi %s1022_s30, %s1178_s30  }
   0x7   : > { %s35_s17 = sadd.s32 1, %s963_s13  ;;  %s231_s18 = sadd.s32 1, %s955_s11 }
   0x8   : > { %p37_p0 = scmp.ge.s32.totalorder %s35_s17, 2  ;;  %p241_p1 = scmp.ne.s32.totalorder %s955_s11, %s951_s10 }
   0x9   : > { %p242_p2 = scmp.eq.s32.totalorder %s800_s15, 1  ;;  %p247_p3 = scmp.ne.s32.totalorder %s951_s10, %s947_s30 }
   0xa   : > { %s1184_s17 = smov (%p37_p0, %s35_s17), 0  ;;  %p248_p5 = scmp.eq.s32.totalorder %s801_s16, 1 }
   0xb   : > { %p1062_p4 = por %p242_p2, %p241_p1  ;;  %s226_s20 = ssub.s32 %s963_s13, %s1184_s17 }
   0xc   : > { %p805_p6 = scmp.ge.s32.totalorder %s967_s14, 1  ;;  %p229_p7 = scmp.eq.s32.totalorder %s226_s20, 0 }
   0xd   : > { %p1069_p8 = por %p248_p5, %p247_p3  ;;  %p340_p9 = scmp.lt.s32.totalorder %s967_s14, 3 }
   0xe   : > { %s1075_s22 = scalar_select %p229_p7, %s955_s11, %s231_s18  }
   0xf   : > { %p341_p10 = pnand %p805_p6, %p340_p9 }
  0x10   : > { %p400_p11 = scmp.lt.s32.totalorder (!%p341_p10), %s959_s12, 1  ;;  %s1177_s0 = sld [smem:[#allocation5_spill]] (!%p341_p10) }
  0x11   : > { %344 = sbr.rel (%p341_p10) target bundleno = 669 (0x29d), region = 52  ;;  %s970_s18 = smov (!%p341_p10), 127  }
  0x12   : > { %s971_s20 = smov (!%p341_p10), 126   ;;  %s388_s15 = sand.u32 (!%p341_p10), 1, %s951_s10  }
  0x13   : > { %s806_s16 = sshll.u32 (!%p341_p10), %s388_s15, 3 }
  0x16   : > { %v969_v0 = vmov 0   ;;  %v433_v1 = vld [vmem:[%s1168_s4] sm:$0xf]  ;;  %s1082_s25 = scalar_select %p400_p11, %s959_s12, 1  ;;  %vm439_vm0 = vcmask 195584   ;;  %vm465_vm1 = vcmask 64512  }
  0x17   : > { %887 = vset.pattern.permute.xlu0 %v969_v0  ;;  %888 = vset.pattern.permute.xlu1 %v969_v0  ;;  %v429_v5 = vld [vmem:[%s1167_s3] sm:$0xf]  ;;  %vm497_vm2 = vcmask 1043456   ;;  %vm521_vm3 = vcmask 97280   ;;  %vm493_vm4 = vcmask 31744   ;;  %v820_v17 = vld [vmem:[%s1169_s5 + $0x10] sm:$0xff] }
  0x18   : > { %436 = vperm.xlu0 %887, %v433_v1   ;;  %s828_s26 = smul.u32 24, %s1082_s25  ;;  %v464_v6 = vld [vmem:[%s1166_s2] sm:$0xff]  ;;  %s827_s23 = sshll.u32 %s1082_s25, 4  ;;  %v817_v18 = vld [vmem:[%s1169_s5 + $0x8] sm:$0xff]  ;;  %vm616_vm5 = vcmask 130048  }
  0x19   : > { %484 = vmatpush.msra.mxu1 %v464_v6  ;;  %s417_s27 = scalar_lea.vmem %s1165_s1, %s827_s23  ;;  %v489_v13 = vld [vmem:[%s1170_s6] sm:$0xff] }
  0x1a   : > { %s408_s29 = scalar_lea.vmem %s1177_s0, %s828_s26  ;;  %v491_v11 = vld [vmem:[%s417_s27 + $0x8] sm:$0xf]  ;;  %v490_v12 = vld [vmem:[%s417_s27] sm:$0xff]  ;;  %s390_s26 = scalar_lea.vmem [#allocation2], %s806_s16 }
  0x1b   : > { %v432_v2 = vld [vmem:[%s408_s29 + $0x10] sm:$0xff]  ;;  %v431_v3 = vld [vmem:[%s408_s29 + $0x8] sm:$0xff]  ;;  %v430_v4 = vld [vmem:[%s408_s29] sm:$0xff]  ;;  %815 = vmatpush.msk.msra.mxu3 %vm497_vm2, %v491_v11  ;;  %s650_s27 = sshll.u32 %s390_s26, 4  ;;  %s630_s29 = scalar_lea.sflag [#allocation3], %s388_s15  ;;  %s651_s27 = int_to_ptr.vmem [resolvable:$true] %s650_s27 }
  0x1c   : > { %456 = vmatpush.msra.mxu0 %v432_v2  ;;  %v492_v15 = vld [vmem:[%s1169_s5] sm:$0xff] }
  0x1d   : > { %543 = vmatpush.msra.mxu3 %v490_v12  ;;  %v608_v16 = vld [vmem:[%s1171_s7] sm:$0xff] }
  0x1e   : > { %457 = vmatpush.msra.mxu0 %v431_v3  ;;  %816 = vmatmul.msk.f32.vlgmr.msra.gmra.mxu3 %vm521_vm3, %v489_v13 }
  0x20   : > { %458 = vmatpush.msra.mxu0 %v430_v4 }
  0x21   : > { %811 = vmatmul.msk.f32.vlgmr.msra.gmra.mxu0 %vm439_vm0, %v429_v5 }
  0x8a   : > { %v437_v7 = vpop.permute.xlu0 %436 }
  0x9e   : > { %v460_v8 = vpop.f32.mrf.mxu0 }
  0x9f   : > { %v461_v9 = vadd.f32 %v460_v8, %v437_v7 }
  0xa1   : > { %v463_v10 = vmax.f32 %v461_v9, 0.0  ;;  %v545_v22 = vpop.f32.mrf.mxu3 }
  0xa3   : > { %812 = vmatmul.msk.f32.vlgmr.msra.gmra.mxu1 %vm465_vm1, %v463_v10 }
 0x120   : > { %v486_v14 = vpop.f32.mrf.mxu1 }
 0x121   : > { %550 = vrot.lane.b32.xlu1 %v486_v14, %s970_s18  ;;  %580 = vrot.lane.b32.xlu0 %v486_v14, %s971_s20  ;;  %s824_s18 = sshll.u32 %s959_s12, 3  ;;  %s909_s20 = scalar_lea.hbm %s1172_s8, 16 }
 0x122   : > { %813 = vmatpush.msk.msra.mxu2 %vm497_vm2, %v486_v14  ;;  %s648_s24 = scalar_lea.hbm %s1172_s8, %s824_s18 }
 0x123   : > { %814 = vmatmul.msk.f32.vlgmr.msra.gmra.mxu2 %vm493_vm4, %v492_v15  ;;  %s652_s28 = sshll.u32 %s648_s24, 4  ;;  %s653_s28 = int_to_ptr.hbm [resolvable:$true] %s652_s28 }
 0x124   : > { %s903_s12 = sshra.s32 %s653_s28, 4  ;;  %s904_s12 = int_to_ptr.hbm [resolvable:$true] %s903_s12 }
 0x125   : > { %s905_s0 = scalar_lea.hbm %s904_s12, 8  ;;  %p910_p1 = scmp.lt.s32.totalorder %s904_s12, %s1172_s8 }
 0x126   : > { %p906_p12 = scmp.ne.s32.totalorder %s904_s12, %s905_s0  ;;  %p911_p2 = scmp.lt.s32.totalorder %s909_s20, %s905_s0 }
 0x128   : > { %p907_p13 = pnand %p906_p12, %p1062_p4  ;;  %p912_p3 = por %p911_p2, %p910_p1 }
 0x129   : > { %611 = vperm.xlu1 %888, %v608_v16  }
 0x12a   : > { %p908_p0 = pneg %p907_p13 }
 0x12c   : > { %p913_p5 = pnand %p912_p3, %p908_p0 }
 0x193   : > { %v551_v19 = vpop.permute.xlu1 %550  ;;  %v581_v20 = vpop.permute.xlu0 %580 }
 0x194   : > { %818 = vmatpush.msk.msrb.mxu1 %vm497_vm2, %v551_v19  ;;  %821 = vmatpush.msk.msrb.mxu2 %vm497_vm2, %v581_v20 }
 0x195   : > { %822 = vmatmul.msk.f32.vlgmr.msrb.gmra.mxu2 %vm493_vm4, %v820_v17  ;;  %819 = vmatmul.msk.f32.vlgmr.msrb.gmra.mxu1 %vm493_vm4, %v817_v18 }
 0x19b   : > { %v612_v27 = vpop.permute.xlu1 %611 }
 0x1a6   : > { %v518_v21 = vpop.f32.mrf.mxu2 }
 0x1a7   : > { %v546_v23 = vadd.f32 %v545_v22, %v518_v21 }
 0x212   : > { %v574_v24 = vpop.f32.mrf.mxu1 }
 0x213   : > { %v577_v25 = vadd.f32 %v574_v24, %v546_v23 }
 0x218   : > { %v604_v26 = vpop.f32.mrf.mxu2 }
 0x219   : > { %v607_v28 = vadd.f32 %v604_v26, %v577_v25 }
 0x21b   : > { %v614_v29 = vadd.f32 %v612_v27, %v607_v28 }
 0x21d   : > { %v615_v30 = vmax.f32 %v614_v29, 0.0 }
 0x21f   : > { %v618_v31 = vsel %vm616_vm5, %v615_v30, 0.0  ;;  %617 = vst.msk [vmem:[%s390_s26] sm:$0xff] %vm616_vm5, %v615_v30 }
 0x220   : > { %619 = vadd.xlane.f32.xlu2 %v618_v31 }
 0x221   : > { %916 = shalt.err (!%p913_p5)
}
 0x222   : > { %829 = dma.vmem_to_hbm [thread:$0]  (%p1062_p4), %s651_s27, 128, %s653_s28, %s630_s29   ;;  %v623_v32 = vmul.f32 %v615_v30, %v615_v30  ;;  %vm621_vm6 = vcmask 7168   ;;  %vm627_vm7 = vcmask 15368  }
 0x223   : > { %s810_s15 = sshll.u32 %s1082_s25, 3 }
 0x224   : > { %v624_v33 = vsel %vm616_vm5, %v623_v32, 0.0  ;;  %s428_s18 = scalar_lea.vmem %s1173_s9, %s810_s15 }
 0x228   : > { %625 = vadd.xlane.f32.xlu2 %v624_v33 }
 0x293   : > { %v620_v34 = vpop.xlane.xlu2 %619 }
 0x294   : > { %622 = vst.msk [vmem:[%s428_s18] sm:$0xff] %vm621_vm6, %v620_v34 }
 0x29b   : > { %v626_v35 = vpop.xlane.xlu2 %625 }
 0x29c   : > { %628 = vst.msk [vmem:[%s428_s18] sm:$0xff] %vm627_vm7, %v626_v35 }
 0x29d PF: > { %p835_p4 = scmp.ge.s32.totalorder %s967_s14, 2  ;;  %s667_s0 = sand.u32 1, %s947_s30  }
 0x29e   : > { %s668_s19 = scalar_lea.sflag [#allocation3], %s667_s0 }
 0x29f   : > { %p832_p6 = pnand %p835_p4, %p1069_p8 }
 0x2a1   : > { %p833_p7 = pneg %p832_p6 }
 0x2a3   : > { %942 = dma.done.wait (%p833_p7), %s668_s19, 128  }
 0x2a4   : > { %944 = vsyncadd (%p833_p7), %s668_s19, 4294967168  ;;  %s23_s14 = sadd.s32 1, %s967_s14   ;;  %s1178_s30 = smov %s951_s10 }
 0x2a5   : > { %p20_p9 = scmp.ge.s32.totalorder %s23_s14, 4   ;;  %s1179_s10 = smov %s955_s11 }
 0x2a6   : > { %s1180_s11 = smov %s1075_s22  ;;  %s1181_s12 = smov %s963_s13 }
 0x2a7   : > { %s1182_s13 = smov %s1184_s17  ;;  %22 = sbr.rel (!%p20_p9) target bundleno = 6 (0x6), region = 107 }
 0x2ac   :  { %684 = vsyncpa [#allocation3], 1 }
 0x2ad   :  { %686 = vsyncpa [#allocation3 + $0x1], 1 }

</bundles_post_ra>
